<compile_context>
chip_gen: v5e
topology: v5e:2x2
jax: 0.10.0
libtpu: 0.0.40
codegen_flags: <defaults>
</compile_context>

<pallas_src>
import functools

import jax
import jax.numpy as jnp
from jax.experimental import pallas as pl
from jax.experimental.pallas import tpu as pltpu


def _round_up(x, m):
    return (x + m - 1) // m * m


# ----------------------------- fused MLP kernel -------------------------------
def _fused_mlp_kernel(x_ref, wgu_ref, wd_ref, o_ref, acc_ref, *, ti):
    """One grid step = (reduction split s, token tile i, intermediate tile j).

    x_ref  : (tm, H)     bf16  token tile (resident across the j reduction)
    wgu_ref: (H, 2*ti)   bf16  [gate_tile | up_tile] columns for this step
    wd_ref : (ti, H)     bf16  down_proj rows for this step
    o_ref  : (1, tm, H)        partial output, written at the last j of a split
    acc_ref: (tm, H)     f32   down-proj accumulator (VMEM scratch)
    """
    j = pl.program_id(2)

    @pl.when(j == 0)
    def _init():
        acc_ref[...] = jnp.zeros_like(acc_ref)

    x = x_ref[...]                                                    # bf16 (tm, H)

    # Single MXU pass over the fused [gate | up] weight tile; f32 accumulation.
    gu = jnp.dot(x, wgu_ref[...], preferred_element_type=jnp.float32)  # (tm, 2*ti)
    g = gu[:, :ti]
    u = gu[:, ti:]

    # silu(g) * u in f32 on VPU; exp and approx reciprocal both use the EUP slot
    # and hide under the MXU work.
    sig = pl.reciprocal(1.0 + jnp.exp(-g), approx=True)
    h = (g * sig) * u

    # Partial down-projection for this intermediate tile, accumulated in f32.
    acc_ref[...] += jnp.dot(h.astype(wd_ref.dtype), wd_ref[...],
                            preferred_element_type=jnp.float32)

    @pl.when(j == pl.num_programs(2) - 1)
    def _finalize():
        o_ref[0] = acc_ref[...].astype(o_ref.dtype)


# ----------------------------- config selection -------------------------------
def _chip_config():
    """Generation-dependent tile targets and VMEM limit."""
    kind = ""
    try:
        kind = jax.devices()[0].device_kind.lower()
    except Exception:
        pass
    vmem_cap = None
    try:
        vmem_cap = getattr(pltpu.get_tpu_info(), "vmem_capacity_bytes", None)
    except Exception:
        vmem_cap = None
    if vmem_cap is None:
        vmem_cap = (64 if "v7" in kind else 128) * 1024 * 1024

    if "v7" in kind:
        tm_t, ti_t, two_tc = 512, 256, True      # 64 MiB VMEM / 2 TCs
    elif "v6" in kind:
        tm_t, ti_t, two_tc = 1024, 512, False    # ~650 FLOP/byte ridge
    elif "v5e" in kind or "v5 lite" in kind or "v5lite" in kind:
        tm_t, ti_t, two_tc = 256, 512, False     # ~240 FLOP/byte ridge
    else:
        tm_t, ti_t, two_tc = 512, 256, False

    vmem_limit = min(int(vmem_cap * 3 // 4), 112 * 1024 * 1024)
    return tm_t, ti_t, vmem_limit, two_tc


def _pick_ti(I, ti_target):
    """Largest multiple-of-128 divisor of I that is <= ti_target (else full I)."""
    c = (min(ti_target, I) // 128) * 128
    while c >= 128:
        if I % c == 0:
            return c
        c -= 128
    if I <= 2048:
        return I            # full-I block (legal: block dim == full array dim)
    raise ValueError(
        f"intermediate_size={I} has no usable multiple-of-128 tile divisor")


def _fit_vmem(tm, ti, H, out_bytes, budget, tm_fixed, ti_fixed):
    """Shrink (auto-chosen) ti then tm until the resident set fits the budget."""
    def est(tm_, ti_):
        return (2 * tm_ * H * 2          # x tile, bf16, double-buffered
                + 2 * H * 2 * ti_ * 2    # fused gate|up weight tile
                + 2 * ti_ * H * 2        # down_proj weight tile
                + 2 * tm_ * H * out_bytes  # output tile
                + tm_ * H * 4)           # f32 accumulator scratch

    while est(tm, ti) > budget:
        if (not ti_fixed) and ti > 128 and ti % 256 == 0:
            ti //= 2
        elif (not tm_fixed) and tm > 16:
            tm = max(16, _round_up(tm // 2, 16))
        else:
            break
    return tm, ti


# ----------------------------- wrapper -----------------------------------------
def mistral_mlp(x, w_gate, w_up, w_down, *, tm=None, ti=None, n_split=None,
                vmem_limit_bytes=None):
    """SwiGLU MLP: silu(x @ w_gate) * (x @ w_up) @ w_down.

    x       : (T, H)   activations (any float dtype; cast to bf16 for the MXU)
    w_gate  : (H, I)   pre-transposed vs. torch Linear
    w_up    : (H, I)
    w_down  : (I, H)
    returns : (T, H)   in x.dtype
    """
    T, H = x.shape
    I = w_gate.shape[1]
    assert w_gate.shape == (H, I) and w_up.shape == (H, I) and w_down.shape == (I, H)
    out_dtype = x.dtype
    out_bytes = jnp.dtype(out_dtype).itemsize

    tm_t, ti_t, vmem_default, two_tc = _chip_config()
    if vmem_limit_bytes is None:
        vmem_limit_bytes = vmem_default

    # --- tile selection (generation-dependent) --------------------------------
    tm_fixed = tm is not None
    ti_fixed = ti is not None

    if tm is None:
        tm = tm_t
    tm = min(tm, _round_up(T, 16))           # bf16 packs 2 rows/sublane -> mult of 16
    tm = max(16, _round_up(tm, 8))
    # Avoid gross token-padding waste for ragged T (keep Tp close to T).
    n_tiles = -(-T // tm)
    while (not tm_fixed) and tm > 256 and (n_tiles * tm - T) * 2 > n_tiles * tm:
        tm //= 2
        n_tiles = -(-T // tm)

    if ti is None:
        ti = _pick_ti(I, ti_t)
    assert I % ti == 0, f"ti={ti} must divide intermediate_size={I}"
    assert (2 * ti) % 128 == 0 or ti == I, f"ti={ti} must be a multiple of 64"

    tm, ti = _fit_vmem(tm, ti, H, out_bytes, int(vmem_limit_bytes * 0.9),
                       tm_fixed, ti_fixed)

    Tp = _round_up(T, tm)
    n_steps = I // ti

    # --- split of the I reduction across a parallel grid axis -----------------
    # On v7x decode (a single token tile) the second TensorCore would otherwise
    # be idle; splitting the reduction gives it half of the weight stream.
    if n_split is None:
        n_split = 2 if (two_tc and Tp // tm == 1
                        and n_steps >= 2 and n_steps % 2 == 0) else 1
    if n_steps % n_split != 0:
        n_split = 1
    sps = n_steps // n_split                 # reduction steps per split

    # --- operand prep (bf16 at MXU inputs; f32 math stays in-kernel) ----------
    xb = x.astype(jnp.bfloat16)
    if Tp != T:
        xb = jnp.pad(xb, ((0, Tp - T), (0, 0)))

    # Pack gate/up into one tile-interleaved (H, 2*I) stream:
    # columns [j*2*ti : j*2*ti+ti] = gate tile j, next ti columns = up tile j.
    wg = w_gate.astype(jnp.bfloat16).reshape(H, n_steps, ti)
    wu = w_up.astype(jnp.bfloat16).reshape(H, n_steps, ti)
    wgu = jnp.concatenate([wg, wu], axis=2).reshape(H, 2 * I)
    wd = w_down.astype(jnp.bfloat16)

    partial_dtype = out_dtype if n_split == 1 else jnp.float32
    grid = (n_split, Tp // tm, sps)          # reduction axis last

    partials = pl.pallas_call(
        functools.partial(_fused_mlp_kernel, ti=ti),
        out_shape=jax.ShapeDtypeStruct((n_split, Tp, H), partial_dtype),
        grid_spec=pltpu.PrefetchScalarGridSpec(
            num_scalar_prefetch=0,
            grid=grid,
            in_specs=[
                pl.BlockSpec((tm, H), lambda s, i, j: (i, 0)),           # x
                pl.BlockSpec((H, 2 * ti), lambda s, i, j: (0, s * sps + j)),  # gate|up
                pl.BlockSpec((ti, H), lambda s, i, j: (s * sps + j, 0)),      # down
            ],
            out_specs=pl.BlockSpec((1, tm, H), lambda s, i, j: (s, i, 0)),
            scratch_shapes=[pltpu.VMEM((tm, H), jnp.float32)],
        ),
        compiler_params=pltpu.CompilerParams(
            dimension_semantics=("parallel", "parallel", "arbitrary"),
            vmem_limit_bytes=int(vmem_limit_bytes),
        ),
    )(xb, wgu, wd)

    if n_split == 1:
        out = partials[0]
    else:
        out = partials.sum(axis=0).astype(out_dtype)
    return out[:T]


# ----------------------------- pure-JAX reference -----------------------------
def mlp_ref(x, w_gate, w_up, w_down):
    xb = x.astype(jnp.bfloat16)
    g = jnp.dot(xb, w_gate.astype(jnp.bfloat16), preferred_element_type=jnp.float32)
    u = jnp.dot(xb, w_up.astype(jnp.bfloat16), preferred_element_type=jnp.float32)
    h = (g * jax.nn.sigmoid(g)) * u
    o = jnp.dot(h.astype(jnp.bfloat16), w_down.astype(jnp.bfloat16),
                preferred_element_type=jnp.float32)
    return o.astype(x.dtype)


# ----------------------------- main -------------------------------------------
if __name__ == "__main__":
    HIDDEN = 128
    INTERMEDIATE = 512
    SEQ_LEN = 16

    key = jax.random.PRNGKey(0)
    kx, kg, ku, kd = jax.random.split(key, 4)

    x = jax.random.normal(kx, (SEQ_LEN, HIDDEN), dtype=jnp.float32)
    # Weights stored bf16 (as loaded on-device), pre-transposed to
    # (in_features, out_features).
    w_gate = (0.05 * jax.random.normal(kg, (HIDDEN, INTERMEDIATE), jnp.float32)
              ).astype(jnp.bfloat16)
    w_up = (0.05 * jax.random.normal(ku, (HIDDEN, INTERMEDIATE), jnp.float32)
            ).astype(jnp.bfloat16)
    w_down = (0.05 * jax.random.normal(kd, (INTERMEDIATE, HIDDEN), jnp.float32)
              ).astype(jnp.bfloat16)

    ref = mlp_ref(x, w_gate, w_up, w_down)

    # 1) default path: ti=128 so the toy shapes exercise a multi-step I reduction.
    fn = jax.jit(functools.partial(mistral_mlp, ti=128))
    out = jax.block_until_ready(fn(x, w_gate, w_up, w_down))
    assert out.shape == (SEQ_LEN, HIDDEN)
    assert bool(jnp.all(jnp.isfinite(out)))
    assert bool(jnp.allclose(out, ref, rtol=2e-2, atol=3e-3)), (
        float(jnp.max(jnp.abs(out - ref))))

    # 2) split-reduction path (the v7x decode configuration: two parallel
    #    reduction halves, f32 partials summed outside the kernel).
    fn2 = jax.jit(functools.partial(mistral_mlp, ti=128, n_split=2))
    out2 = jax.block_until_ready(fn2(x, w_gate, w_up, w_down))
    assert out2.shape == (SEQ_LEN, HIDDEN)
    assert bool(jnp.all(jnp.isfinite(out2)))
    assert bool(jnp.allclose(out2, ref, rtol=2e-2, atol=3e-3)), (
        float(jnp.max(jnp.abs(out2 - ref))))

    print("KERNEL_OK")
</pallas_src>

<mosaic_0001>
module attributes {stable_mosaic.version = 11 : i64} {
  func.func @_fused_mlp_kernel(%arg0: i32, %arg1: i32, %arg2: i32, %arg3: memref<16x128xbf16, #tpu.memory_space<vmem>>, %arg4: memref<128x256xbf16, #tpu.memory_space<vmem>>, %arg5: memref<128x128xbf16, #tpu.memory_space<vmem>>, %arg6: memref<1x16x128xf32, #tpu.memory_space<vmem>>, %arg7: memref<16x128xf32, #tpu.memory_space<vmem>>) attributes {dimension_semantics = [#tpu.dimension_semantics<parallel>, #tpu.dimension_semantics<parallel>, #tpu.dimension_semantics<arbitrary>], iteration_bounds = array<i64: 1, 1, 4>, scalar_prefetch = 0 : i64, scratch_operands = 1 : i64, tpu.core_type = #tpu.core_type<tc>, window_params = [{transform_indices = @transform_0, window_bounds = array<i64: 16, 128>}, {transform_indices = @transform_1, window_bounds = array<i64: 128, 256>}, {transform_indices = @transform_2, window_bounds = array<i64: 128, 128>}, {transform_indices = @transform_3, window_bounds = array<i64: 1, 16, 128>}]} {
    %c0_i32 = arith.constant 0 : i32
    %0 = arith.cmpi eq, %arg2, %c0_i32 : i32
    %1 = arith.extui %0 : i1 to i32
    %c0_i32_0 = arith.constant 0 : i32
    %2 = arith.cmpi ne, %1, %c0_i32_0 : i32
    scf.if %2 {
      %cst_14 = arith.constant 0.000000e+00 : f32
      %25 = vector.broadcast %cst_14 : f32 to vector<16x128xf32>
      %c0_15 = arith.constant 0 : index
      %c0_16 = arith.constant 0 : index
      %26 = vector.load %arg7[%c0_15, %c0_16] : memref<16x128xf32, #tpu.memory_space<vmem>>, vector<16x128xf32>
      tpu.vector_store %arg7[%c0_15, %c0_16], %25 {strides = array<i32>} : memref<16x128xf32, #tpu.memory_space<vmem>>, vector<16x128xf32>,
    } else {
    }
    %c0 = arith.constant 0 : index
    %c0_1 = arith.constant 0 : index
    %3 = vector.load %arg3[%c0, %c0_1] : memref<16x128xbf16, #tpu.memory_space<vmem>>, vector<16x128xbf16>
    %c0_2 = arith.constant 0 : index
    %c0_3 = arith.constant 0 : index
    %4 = vector.load %arg4[%c0_2, %c0_3] : memref<128x256xbf16, #tpu.memory_space<vmem>>, vector<128x256xbf16>
    %cst = arith.constant dense<0.000000e+00> : vector<16x256xf32>
    %5 = tpu.matmul %3, %4, %cst {dimension_numbers = #tpu.dot_dimension_numbers<[1], [0], [0], [1], [0, 0, 1, 1], [], []>} : vector<16x128xbf16>, vector<128x256xbf16>, vector<16x256xf32> -> vector<16x256xf32>
    %6 = vector.extract_strided_slice %5 {offsets = [0, 0], sizes = [16, 128], strides = [1, 1]} : vector<16x256xf32> to vector<16x128xf32>
    %7 = vector.extract_strided_slice %5 {offsets = [0, 128], sizes = [16, 128], strides = [1, 1]} : vector<16x256xf32> to vector<16x128xf32>
    %cst_4 = arith.constant 0.000000e+00 : f32
    %8 = vector.broadcast %cst_4 : f32 to vector<16x128xf32>
    %9 = arith.subf %8, %6 : vector<16x128xf32>
    %10 = math.exp %9 : vector<16x128xf32>
    %cst_5 = arith.constant 1.000000e+00 : f32
    %11 = vector.broadcast %cst_5 : f32 to vector<16x128xf32>
    %12 = arith.addf %11, %10 : vector<16x128xf32>
    %13 = tpu.reciprocal %12 {approx = true} : vector<16x128xf32> -> vector<16x128xf32>
    %14 = arith.mulf %6, %13 : vector<16x128xf32>
    %15 = arith.mulf %14, %7 : vector<16x128xf32>
    %c0_6 = arith.constant 0 : index
    %c0_7 = arith.constant 0 : index
    %16 = vector.load %arg7[%c0_6, %c0_7] : memref<16x128xf32, #tpu.memory_space<vmem>>, vector<16x128xf32>
    %17 = arith.truncf %15 : vector<16x128xf32> to vector<16x128xbf16>
    %c0_8 = arith.constant 0 : index
    %c0_9 = arith.constant 0 : index
    %18 = vector.load %arg5[%c0_8, %c0_9] : memref<128x128xbf16, #tpu.memory_space<vmem>>, vector<128x128xbf16>
    %cst_10 = arith.constant dense<0.000000e+00> : vector<16x128xf32>
    %19 = tpu.matmul %17, %18, %cst_10 {dimension_numbers = #tpu.dot_dimension_numbers<[1], [0], [0], [1], [0, 0, 1, 1], [], []>} : vector<16x128xbf16>, vector<128x128xbf16>, vector<16x128xf32> -> vector<16x128xf32>
    %20 = arith.addf %16, %19 : vector<16x128xf32>
    %c0_11 = arith.constant 0 : index
    %c0_12 = arith.constant 0 : index
    %21 = vector.load %arg7[%c0_11, %c0_12] : memref<16x128xf32, #tpu.memory_space<vmem>>, vector<16x128xf32>
    tpu.vector_store %arg7[%c0_11, %c0_12], %20 {strides = array<i32>} : memref<16x128xf32, #tpu.memory_space<vmem>>, vector<16x128xf32>,
    %c3_i32 = arith.constant 3 : i32
    %22 = arith.cmpi eq, %arg2, %c3_i32 : i32
    %23 = arith.extui %22 : i1 to i32
    %c0_i32_13 = arith.constant 0 : i32
    %24 = arith.cmpi ne, %23, %c0_i32_13 : i32
    scf.if %24 {
      %c0_14 = arith.constant 0 : index
      %c0_15 = arith.constant 0 : index
      %25 = vector.load %arg7[%c0_14, %c0_15] : memref<16x128xf32, #tpu.memory_space<vmem>>, vector<16x128xf32>
      %c0_16 = arith.constant 0 : index
      %c0_17 = arith.constant 0 : index
      %c0_18 = arith.constant 0 : index
      %26 = vector.load %arg6[%c0_16, %c0_17, %c0_18] : memref<1x16x128xf32, #tpu.memory_space<vmem>>, vector<1x16x128xf32>
      %27 = vector.shape_cast %26 : vector<1x16x128xf32> to vector<16x128xf32>
      %28 = vector.shape_cast %25 : vector<16x128xf32> to vector<1x16x128xf32>
      tpu.vector_store %arg6[%c0_16, %c0_17, %c0_18], %28 {strides = array<i32>} : memref<1x16x128xf32, #tpu.memory_space<vmem>>, vector<1x16x128xf32>,
    } else {
    }
    return
  }
  func.func @transform_0(%arg0: i32, %arg1: i32, %arg2: i32) -> (i32, i32) {
    %c0_i32 = arith.constant 0 : i32
    %c0_i32_0 = arith.constant 0 : i32
    return %arg1, %c0_i32 : i32, i32
  }
  func.func @transform_1(%arg0: i32, %arg1: i32, %arg2: i32) -> (i32, i32) {
    %c4_i32 = arith.constant 4 : i32
    %0 = arith.muli %arg0, %c4_i32 : i32
    %1 = arith.addi %0, %arg2 : i32
    %c0_i32 = arith.constant 0 : i32
    %c0_i32_0 = arith.constant 0 : i32
    return %c0_i32, %1 : i32, i32
  }
  func.func @transform_2(%arg0: i32, %arg1: i32, %arg2: i32) -> (i32, i32) {
    %c4_i32 = arith.constant 4 : i32
    %0 = arith.muli %arg0, %c4_i32 : i32
    %1 = arith.addi %0, %arg2 : i32
    %c0_i32 = arith.constant 0 : i32
    %c0_i32_0 = arith.constant 0 : i32
    return %1, %c0_i32 : i32, i32
  }
  func.func @transform_3(%arg0: i32, %arg1: i32, %arg2: i32) -> (i32, i32, i32) {
    %c0_i32 = arith.constant 0 : i32
    %c0_i32_0 = arith.constant 0 : i32
    return %arg0, %arg1, %c0_i32 : i32, i32, i32
  }
}

</mosaic_0001>

<bundles_post_ra>
// kernel: mistral_mlp.1
= control target key start
LH: loop header
LB: loop body
LE: loop exit
PB: predicated region body
PF: predicated region fallthrough
CT: control target
= control target key end

     0   :  { %8 = vsyncpa [#allocation5], 0  ;;  %s996_s12 = smov 0   ;;  %s998_s13 = smov 0   ;;  %s1134_s0 = inlined_call_operand.vmem [shape: bf16[16,128], index: 0, kind: input, shape index: {}]   ;;  %s1135_s1 = inlined_call_operand.vmem [shape: bf16[128,1024], index: 1, kind: input, shape index: {}]   ;;  %s1136_s2 = inlined_call_operand.vmem [shape: bf16[512,128], index: 2, kind: input, shape index: {}]   ;;  %s1137_s3 = inlined_call_operand.hbm [shape: f32[1,16,128], index: 3, kind: output, shape index: {}]  }
   0x1   :  { %s1000_s14 = smov 0   ;;  %s1002_s15 = smov 0  }
   0x2   :  { %s1004_s16 = smov 0  }
   0x3 LB: > { %s699_s17 = sadd.s32 4294967295, %s970_s16   ;;  %s26_s18 = sadd.s32 1, %s966_s15  ;;  %s970_s16 = sphi %s1004_s16, %s14_s16   ;;  %s966_s15 = sphi %s1002_s15, %s1141_s15   ;;  %s962_s14 = sphi %s1000_s14, %s1140_s14   ;;  %s958_s13 = sphi %s998_s13, %s1139_s13   ;;  %s954_s12 = sphi %s996_s12, %s1138_s12  }
   0x4   : > { %p27_p0 = scmp.ge.s32.totalorder %s26_s18, 4  ;;  %p77_p1 = scmp.ne.s32.totalorder %s958_s13, %s954_s12 }
   0x5   : > { %p78_p2 = scmp.eq.s32.totalorder %s970_s16, 0  ;;  %s70_s20 = sadd.s32 1, %s958_s13 }
   0x6   : > { %s1143_s18 = smov (%p27_p0, %s26_s18), 0  ;;  %p702_p5 = scmp.ge.s32.totalorder %s970_s16, 4 }
   0x7   : > { %p79_p3 = por %p78_p2, %p77_p1  ;;  %s67_s19 = ssub.s32 %s966_s15, %s1143_s18 }
   0x8   : > { %p68_p4 = scmp.eq.s32.totalorder %s67_s19, 0  ;;  %170 = sbr.rel (%p702_p5) target bundleno = 33 (0x21), region = 20 }
   0xa   : > { %s1032_s21 = scalar_select %p68_p4, %s958_s13, %s70_s20  }
   0xd   : > { %173 = sbr.rel (!%p79_p3) target bundleno = 33 (0x21), region = 24  ;;  %s175_s22 = sand.u32 (%p79_p3), 1, %s958_s13  }
   0xe   : > { %s816_s23 = sshll.u32 (%p79_p3), %s966_s15, 3  ;;  %s703_s24 = sshll.u32 (%p79_p3), %s175_s22, 7 }
   0xf   : > { %s1040_s27 = scalar_lea.vmem (%p79_p3), %s1135_s1, %s816_s23  ;;  %s177_s28 = scalar_lea.vmem (%p79_p3), [#allocation3], %s703_s24 }
  0x10   : > { %v241_v0 = vld [vmem:[%s1040_s27] sm:$0xff] (%p79_p3) }
  0x11   : > { %v243_v1 = vld [vmem:[%s1040_s27 + $0x20] sm:$0xff] (%p79_p3)  ;;  %242 = vst [vmem:[%s177_s28] sm:$0xff] (%p79_p3), %v241_v0 }
  0x12   : > { %v245_v2 = vld [vmem:[%s1040_s27 + $0x40] sm:$0xff]  ;;  %244 = vst [vmem:[%s177_s28 + $0x8] sm:$0xff] %v243_v1 }
  0x13   : > { %v247_v3 = vld [vmem:[%s1040_s27 + $0x60] sm:$0xff]  ;;  %246 = vst [vmem:[%s177_s28 + $0x10] sm:$0xff] %v245_v2 }
  0x14   : > { %v249_v4 = vld [vmem:[%s1040_s27 + $0x80] sm:$0xff]  ;;  %248 = vst [vmem:[%s177_s28 + $0x18] sm:$0xff] %v247_v3 }
  0x15   : > { %v251_v5 = vld [vmem:[%s1040_s27 + $0xa0] sm:$0xff]  ;;  %250 = vst [vmem:[%s177_s28 + $0x20] sm:$0xff] %v249_v4 }
  0x16   : > { %v253_v6 = vld [vmem:[%s1040_s27 + $0xc0] sm:$0xff]  ;;  %252 = vst [vmem:[%s177_s28 + $0x28] sm:$0xff] %v251_v5 }
  0x17   : > { %v255_v7 = vld [vmem:[%s1040_s27 + $0xe0] sm:$0xff]  ;;  %254 = vst [vmem:[%s177_s28 + $0x30] sm:$0xff] %v253_v6 }
  0x18   : > { %v257_v8 = vld [vmem:[%s1040_s27 + $0x100] sm:$0xff]  ;;  %256 = vst [vmem:[%s177_s28 + $0x38] sm:$0xff] %v255_v7 }
  0x19   : > { %v259_v9 = vld [vmem:[%s1040_s27 + $0x120] sm:$0xff]  ;;  %258 = vst [vmem:[%s177_s28 + $0x40] sm:$0xff] %v257_v8 }
  0x1a   : > { %v261_v10 = vld [vmem:[%s1040_s27 + $0x140] sm:$0xff]  ;;  %260 = vst [vmem:[%s177_s28 + $0x48] sm:$0xff] %v259_v9 }
  0x1b   : > { %v263_v11 = vld [vmem:[%s1040_s27 + $0x160] sm:$0xff]  ;;  %262 = vst [vmem:[%s177_s28 + $0x50] sm:$0xff] %v261_v10 }
  0x1c   : > { %v265_v12 = vld [vmem:[%s1040_s27 + $0x180] sm:$0xff]  ;;  %264 = vst [vmem:[%s177_s28 + $0x58] sm:$0xff] %v263_v11 }
  0x1d   : > { %v267_v13 = vld [vmem:[%s1040_s27 + $0x1a0] sm:$0xff]  ;;  %266 = vst [vmem:[%s177_s28 + $0x60] sm:$0xff] %v265_v12 }
  0x1e   : > { %v269_v14 = vld [vmem:[%s1040_s27 + $0x1c0] sm:$0xff]  ;;  %268 = vst [vmem:[%s177_s28 + $0x68] sm:$0xff] %v267_v13 }
  0x1f   : > { %v271_v15 = vld [vmem:[%s1040_s27 + $0x1e0] sm:$0xff]  ;;  %270 = vst [vmem:[%s177_s28 + $0x70] sm:$0xff] %v269_v14 }
  0x20   : > { %272 = vst [vmem:[%s177_s28 + $0x78] sm:$0xff] %v271_v15 }
  0x21 PF: > { %p706_p6 = scmp.ge.s32.totalorder %s970_s16, 1  ;;  %p290_p7 = scmp.lt.s32.totalorder %s970_s16, 5 }
  0x23   : > { %p291_p8 = pnand %p706_p6, %p290_p7 }
  0x24   : > { %s297_s29 = sand.u32 (!%p291_p8), 1, %s954_s12   ;;  %s708_s30 = sshll.u32 (!%p291_p8), %s962_s14, 4 }
  0x25   : > { %294 = sbr.rel (%p291_p8) target bundleno = 401 (0x191), region = 66  ;;  %s707_s4 = sshll.u32 (!%p291_p8), %s297_s29, 7 }
  0x26   : > { %p339_p9 = scmp.lt.s32.totalorder (!%p291_p8), %s708_s30, 63  ;;  %s1067_s9 = scalar_lea.vmem (!%p291_p8), [#allocation3], %s707_s4 }
  0x27   : > { %p710_p10 = scmp.ne.s32.totalorder (!%p291_p8), %s962_s14, 0 }
  0x2a   : > { %s1145_s30 = smov (!%p339_p9, %s708_s30), 63  ;;  %350 = sbr.rel (%p710_p10) target bundleno = 50 (0x32), region = 74 }
  0x2b   : > { %s709_s5 = sshll.u32 %s1145_s30, 2 }
  0x2c   : > { %s1065_s8 = scalar_lea.vmem %s1136_s2, %s709_s5 }
  0x2f   : > { %v972_v16 = vmov 0.0  }
  0x30   : > { %351 = vst [vmem:[#allocation2] sm:$0xff] %v972_v16 }
  0x31   : > { %352 = vst [vmem:[#allocation2 + $0x8] sm:$0xff] %v972_v16 }
  0x32 PF: > { %v773_v17 = vld [vmem:[%s1067_s9 + $0x70] sm:$0xf]  ;;  %v833_v18 = vld [vmem:[%s1067_s9 + $0x74] sm:$0xf0]  ;;  %v765_v19 = vld [vmem:[%s1067_s9 + $0x60] sm:$0xf] }
  0x33   : > { %v774_v20 = vor.u32 %v833_v18, %v773_v17  ;;  %v831_v21 = vld [vmem:[%s1067_s9 + $0x64] sm:$0xf0]  ;;  %v832_v22 = vld [vmem:[%s1067_s9 + $0x74] sm:$0xf]  ;;  %v757_v24 = vld [vmem:[%s1067_s9 + $0x50] sm:$0xf] }
  0x34   : > { %v766_v23 = vor.u32 %v831_v21, %v765_v19  ;;  %v775_v25 = vld [vmem:[%s1067_s9 + $0x78] sm:$0xf0]  ;;  %v829_v26 = vld [vmem:[%s1067_s9 + $0x54] sm:$0xf0]  ;;  %v830_v28 = vld [vmem:[%s1067_s9 + $0x64] sm:$0xf] }
  0x35   : > { %457 = vmatpush.bf16.msra.mxu0 %v774_v20  ;;  %v778_v27 = vor.u32 %v832_v22, %v775_v25  ;;  %v767_v29 = vld [vmem:[%s1067_s9 + $0x68] sm:$0xf0]  ;;  %v758_v31 = vor.u32 %v829_v26, %v757_v24  ;;  %v828_v32 = vld [vmem:[%s1067_s9 + $0x54] sm:$0xf]  ;;  %v759_v33 = vld [vmem:[%s1067_s9 + $0x58] sm:$0xf0] }
  0x36   : > { %v770_v30 = vor.u32 %v830_v28, %v767_v29  ;;  %v749_v34 = vld [vmem:[%s1067_s9 + $0x40] sm:$0xf]  ;;  %v827_v35 = vld [vmem:[%s1067_s9 + $0x44] sm:$0xf0]  ;;  %v762_v36 = vor.u32 %v828_v32, %v759_v33  ;;  %v826_v38 = vld [vmem:[%s1067_s9 + $0x44] sm:$0xf] }
  0x37   : > { %471 = vmatpush.bf16.msra.mxu1 %v778_v27  ;;  %v750_v37 = vor.u32 %v827_v35, %v749_v34  ;;  %v751_v39 = vld [vmem:[%s1067_s9 + $0x48] sm:$0xf0]  ;;  %v741_v40 = vld [vmem:[%s1067_s9 + $0x30] sm:$0xf]  ;;  %v825_v41 = vld [vmem:[%s1067_s9 + $0x34] sm:$0xf0] }
  0x38   : > { %v754_v42 = vor.u32 %v826_v38, %v751_v39  ;;  %v742_v43 = vor.u32 %v825_v41, %v741_v40  ;;  %v824_v44 = vld [vmem:[%s1067_s9 + $0x34] sm:$0xf]  ;;  %v743_v45 = vld [vmem:[%s1067_s9 + $0x38] sm:$0xf0]  ;;  %v733_v46 = vld [vmem:[%s1067_s9 + $0x20] sm:$0xf] }
  0x39   : > { %458 = vmatpush.bf16.msra.mxu0 %v766_v23  ;;  %v823_v47 = vld [vmem:[%s1067_s9 + $0x24] sm:$0xf0]  ;;  %v746_v48 = vor.u32 %v824_v44, %v743_v45  ;;  %v822_v50 = vld [vmem:[%s1067_s9 + $0x24] sm:$0xf]  ;;  %v735_v51 = vld [vmem:[%s1067_s9 + $0x28] sm:$0xf0] }
  0x3a   : > { %v734_v49 = vor.u32 %v823_v47, %v733_v46  ;;  %v725_v52 = vld [vmem:[%s1067_s9 + $0x10] sm:$0xf]  ;;  %v821_v53 = vld [vmem:[%s1067_s9 + $0x14] sm:$0xf0]  ;;  %v738_v54 = vor.u32 %v822_v50, %v735_v51  ;;  %v820_v56 = vld [vmem:[%s1067_s9 + $0x14] sm:$0xf] }
  0x3b   : > { %472 = vmatpush.bf16.msra.mxu1 %v770_v30  ;;  %v726_v55 = vor.u32 %v821_v53, %v725_v52  ;;  %v727_v57 = vld [vmem:[%s1067_s9 + $0x18] sm:$0xf0]  ;;  %v717_v58 = vld [vmem:[%s1067_s9] sm:$0xf]  ;;  %v819_v59 = vld [vmem:[%s1067_s9 + $0x4] sm:$0xf0] }
  0x3c   : > { %v730_v60 = vor.u32 %v820_v56, %v727_v57  ;;  %v718_v61 = vor.u32 %v819_v59, %v717_v58  ;;  %v818_v62 = vld [vmem:[%s1067_s9 + $0x4] sm:$0xf]  ;;  %v719_v63 = vld [vmem:[%s1067_s9 + $0x8] sm:$0xf0]  ;;  %v817_v0 = vld [vmem:[%s1134_s0] sm:$0xff]  ;;  %p811_p11 = scmp.ne.s32.totalorder %s962_s14, 3 }
  0x3d   : > { %459 = vmatpush.bf16.msra.mxu0 %v758_v31  ;;  %v722_v1 = vor.u32 %v818_v62, %v719_v63  ;;  %v841_v2 = vld [vmem:[%s1065_s8 + $0x38] sm:$0xff]  ;;  %v840_v3 = vld [vmem:[%s1065_s8 + $0x30] sm:$0xff]  ;;  %v839_v4 = vld [vmem:[%s1065_s8 + $0x28] sm:$0xff] }
  0x3e   : > { %566 = vmatpush.bf16.msra.mxu2 %v841_v2  ;;  %v838_v5 = vld [vmem:[%s1065_s8 + $0x20] sm:$0xff]  ;;  %v837_v6 = vld [vmem:[%s1065_s8 + $0x18] sm:$0xff]  ;;  %v836_v7 = vld [vmem:[%s1065_s8 + $0x10] sm:$0xff] }
  0x3f   : > { %473 = vmatpush.bf16.msra.mxu1 %v762_v36  ;;  %v835_v8 = vld [vmem:[%s1065_s8 + $0x8] sm:$0xff]  ;;  %v834_v9 = vld [vmem:[%s1065_s8] sm:$0xff] }
  0x40   : > { %v499_v29 = vld [vmem:[#allocation2] sm:$0xff]  ;;  %v500_v32 = vld [vmem:[#allocation2 + $0x8] sm:$0xff] }
  0x41   : > { %460 = vmatpush.bf16.msra.mxu0 %v750_v37 }
  0x42   : > { %567 = vmatpush.bf16.msra.mxu2 %v840_v3 }
  0x43   : > { %474 = vmatpush.bf16.msra.mxu1 %v754_v42 }
  0x45   : > { %461 = vmatpush.bf16.msra.mxu0 %v742_v43 }
  0x46   : > { %568 = vmatpush.bf16.msra.mxu2 %v839_v4 }
  0x47   : > { %475 = vmatpush.bf16.msra.mxu1 %v746_v48 }
  0x49   : > { %462 = vmatpush.bf16.msra.mxu0 %v734_v49 }
  0x4a   : > { %569 = vmatpush.bf16.msra.mxu2 %v838_v5 }
  0x4b   : > { %476 = vmatpush.bf16.msra.mxu1 %v738_v54 }
  0x4d   : > { %463 = vmatpush.bf16.msra.mxu0 %v726_v55 }
  0x4e   : > { %570 = vmatpush.bf16.msra.mxu2 %v837_v6 }
  0x4f   : > { %477 = vmatpush.bf16.msra.mxu1 %v730_v60 }
  0x51   : > { %464 = vmatpush.bf16.msra.mxu0 %v718_v61 }
  0x52   : > { %571 = vmatpush.bf16.msra.mxu2 %v836_v7 }
  0x53   : > { %478 = vmatpush.bf16.msra.mxu1 %v722_v1 }
  0x54   : > { %465 = vmatmul.bf16.vlgmr.msra.gmra.mxu0 %v817_v0 }
  0x56   : > { %479 = vmatmul.bf16.vlgmr.msra.gmra.mxu1 %v817_v0  ;;  %572 = vmatpush.bf16.msra.mxu2 %v835_v8 }
  0x5a   : > { %573 = vmatpush.bf16.msra.mxu2 %v834_v9 }
  0xd1   : > { %v466_v10 = vpop.f32.mrf.mxu0 }
  0xd2   : > { %v485_v11 = vsub.f32 0.0, %v466_v10 }
  0xd3   : > { %v480_v20 = vpop.f32.mrf.mxu1 }
  0xd4   : > { %v487_v12 = vmul.f32 1.442695, %v485_v11 }
  0xd6   : > { %892 = vpow2.f32 %v487_v12 }
  0xd9   : > { %v468_v13 = vpop.f32.mrf.mxu0 }
  0xda   : > { %v486_v14 = vsub.f32 0.0, %v468_v13 }
  0xdb   : > { %v482_v25 = vpop.f32.mrf.mxu1 }
  0xdc   : > { %v893_v15 = vpop.eup %892  ;;  %v489_v16 = vmul.f32 1.442695, %v486_v14 }
  0xdd   : > { %v491_v17 = vadd.f32 1.0, %v893_v15 }
  0xde   : > { %894 = vpow2.f32 %v489_v16 }
  0xdf   : > { %896 = vrcp.f32 %v491_v17 }
  0xe4   : > { %v895_v18 = vpop.eup %894 }
  0xe5   : > { %v492_v19 = vadd.f32 1.0, %v895_v18  ;;  %v897_v21 = vpop.eup %896 }
  0xe6   : > { %v495_v22 = vmul.f32 %v897_v21, %v466_v10 }
  0xe7   : > { %898 = vrcp.f32 %v492_v19 }
  0xe8   : > { %v497_v26 = vmul.f32 %v495_v22, %v480_v20 }
  0xed   : > { %v899_v23 = vpop.eup %898 }
  0xee   : > { %v496_v24 = vmul.f32 %v899_v23, %v468_v13 }
  0xf0   : > { %v498_v27 = vmul.f32 %v496_v24, %v482_v25 }
  0xf2   : > { %v501_v28 = vpack.c.bf16 %v498_v27, %v497_v26 }
  0xf4   : > { %574 = vmatmul.bf16.vlgmr.msra.gmra.mxu2 %v501_v28 }
 0x177   : > { %v575_v30 = vpop.f32.mrf.mxu2 }
 0x178   : > { %v580_v31 = vadd.f32 %v575_v30, %v499_v29 }
 0x17a   : > { %582 = vst [vmem:[#allocation2] sm:$0xff] %v580_v31 }
 0x17e   : > { %587 = sbr.rel (%p811_p11) target bundleno = 395 (0x18b), region = 78 }
 0x17f   : > { %v577_v33 = vpop.f32.mrf.mxu2 }
 0x180   : > { %v581_v34 = vadd.f32 %v577_v33, %v500_v32 }
 0x182   : > { %583 = vst [vmem:[#allocation2 + $0x8] sm:$0xff] %v581_v34 }
 0x183   : > { %v588_v35 = vld [vmem:[#allocation2] sm:$0xff] }
 0x184   : > { %590 = vst [vmem:[#allocation4] sm:$0xff] %v588_v35 }
 0x189   : > { %v589_v36 = vld [vmem:[#allocation2 + $0x8] sm:$0xff] }
 0x18a   : > { %591 = vst [vmem:[#allocation4 + $0x8] sm:$0xff] %v589_v36 }
 0x18b PF: > { %p846_p12 = scmp.eq.s32.totalorder %s699_s17, 3  ;;  %s604_s20 = sshll.u32 %s1137_s3, 4  ;;  %s605_s20 = int_to_ptr.hbm [resolvable:$true] %s604_s20 }
 0x18c   : > { %s973_s22 = smov [#allocation4]   ;;  %s974_s24 = smov 128  }
 0x18d   : > { %s602_s23 = sshll.u32 %s973_s22, 4  ;;  %s975_s25 = smov 8   ;;  %s603_s23 = int_to_ptr.vmem [resolvable:$true] %s602_s23 }
 0x18e   : > { %843 = dma.vmem_to_hbm [thread:$0]  (%p846_p12), %s603_s23, 256, %s605_s20, [#allocation5], %s974_s24, %s974_s24, %s975_s25  }
 0x18f   : > { %949 = dma.done.wait (%p846_p12), [#allocation5], 256  }
 0x190   : > { %951 = vsyncadd (%p846_p12), [#allocation5], 4294967040 }
 0x191 PF: > { %s14_s16 = sadd.s32 1, %s970_s16   ;;  %s1138_s12 = smov %s958_s13 }
 0x192   : > { %p11_p13 = scmp.ge.s32.totalorder %s14_s16, 6   ;;  %s1139_s13 = smov %s1032_s21 }
 0x193   : > { %s1140_s14 = smov %s966_s15  ;;  %s1141_s15 = smov %s1143_s18 }
 0x194   :  { %13 = sbr.rel (!%p11_p13) target bundleno = 3 (0x3), region = 117 }
 0x199   :  { %621 = vsyncpa [#allocation5], 1 }
 0x19a   :  { %623 = vsyncpa [#allocation5 + $0x1], 1 }

</bundles_post_ra>
